<compile_context>
chip_gen: v7x
topology: tpu7x:2x2x1
jax: 0.10.0
libtpu: 0.0.40
codegen_flags: <defaults>
</compile_context>

<pallas_src>
import functools

import jax
import jax.numpy as jnp
import numpy as np
from jax.experimental import pallas as pl
from jax.experimental.pallas import tpu as pltpu


# --------------------------------------------------------------------------
# Kernels
# --------------------------------------------------------------------------
def _adain_kernel(x_ref, gb_ref, o_ref, *, eps):
    """Single-pass kernel: full H*W per row tile. x_ref: (TR, HW), gb_ref: (TR, 2)."""
    x = x_ref[...].astype(jnp.float32)
    hw = x.shape[-1]
    inv_hw = 1.0 / hw

    s = jnp.sum(x, axis=-1, keepdims=True)            # (TR, 1)
    ss = jnp.sum(x * x, axis=-1, keepdims=True)       # (TR, 1)
    mean = s * inv_hw
    var = ss * inv_hw - mean * mean                   # biased variance
    inv = jax.lax.rsqrt(var + eps)                    # EUP slot (cheap)

    gamma = gb_ref[:, 0:1].astype(jnp.float32)
    beta = gb_ref[:, 1:2].astype(jnp.float32)
    a = inv * gamma                                   # per-row scale
    b = beta - mean * a                               # per-row shift

    o_ref[...] = (x * a + b).astype(o_ref.dtype)      # 2 VPU ops / element


def _stats_kernel(x_ref, gb_ref, coef_ref, sum_ref, ssq_ref, *, eps, hw, tc):
    """Pass 1 of the column-blocked path: accumulate per-row sum / sum(x^2)."""
    c = pl.program_id(1)

    @pl.when(c == 0)
    def _():
        sum_ref[...] = jnp.zeros_like(sum_ref)
        ssq_ref[...] = jnp.zeros_like(ssq_ref)

    x = x_ref[...].astype(jnp.float32)
    # Mask out-of-range lanes of the (possibly padded) edge column block.
    lane = jax.lax.broadcasted_iota(jnp.int32, x.shape, 1)
    valid = (c * tc + lane) < hw
    x = jnp.where(valid, x, 0.0)

    sum_ref[...] += jnp.sum(x, axis=-1, keepdims=True)
    ssq_ref[...] += jnp.sum(x * x, axis=-1, keepdims=True)

    @pl.when(c == pl.num_programs(1) - 1)
    def _():
        inv_hw = 1.0 / hw
        mean = sum_ref[...] * inv_hw
        var = ssq_ref[...] * inv_hw - mean * mean
        inv = jax.lax.rsqrt(var + eps)
        a = inv * gb_ref[:, 0:1].astype(jnp.float32)
        b = gb_ref[:, 1:2].astype(jnp.float32) - mean * a
        coef_ref[:, 0:1] = a
        coef_ref[:, 1:2] = b


def _apply_kernel(x_ref, coef_ref, o_ref):
    """Pass 2 of the column-blocked path: o = a * x + b."""
    x = x_ref[...].astype(jnp.float32)
    a = coef_ref[:, 0:1]
    b = coef_ref[:, 1:2]
    o_ref[...] = (x * a + b).astype(o_ref.dtype)


# --------------------------------------------------------------------------
# Wrapper
# --------------------------------------------------------------------------
def _round_up(a, b):
    return (a + b - 1) // b * b


def _vmem_capacity_bytes():
    try:
        return int(pltpu.get_tpu_info().vmem_capacity_bytes)
    except Exception:
        # Conservative fallback: assume the smallest VMEM generation (v7x, 64 MiB).
        return 64 * 1024 * 1024


def adain2d(x, gamma, beta, *, eps=1e-5, donate_x=False):
    """AdaIN2d forward.

    x:     (N, C, H, W)
    gamma: (N*C,)   -- per (sample, channel) scale (TUNIT style injection)
    beta:  (N*C,)   -- per (sample, channel) shift
    donate_x: if True and shapes allow, alias the output onto x's HBM buffer.
    """
    N, C, H, W = x.shape
    NC, HW = N * C, H * W
    itemsize = jnp.dtype(x.dtype).itemsize

    x2 = x.reshape(NC, HW)
    gb = jnp.stack([gamma.reshape(NC), beta.reshape(NC)], axis=-1).astype(jnp.float32)

    # Pad the row (instance) axis up to a multiple of 8 sublanes if needed.
    NC_p = _round_up(NC, 8)
    if NC_p != NC:
        x2 = jnp.pad(x2, ((0, NC_p - NC), (0, 0)))
        gb = jnp.pad(gb, ((0, NC_p - NC), (0, 0)))

    # ---------------- generation-aware tile sizing ----------------
    vmem_cap = _vmem_capacity_bytes()                       # 64 MiB v7x, 128 MiB v5e/v6e
    budget = min(vmem_cap // 3, 48 * 1024 * 1024)           # double-buffer working set
    # per row: 2 in-bufs + 2 out-bufs of the native dtype + ~2 fp32 temporaries
    bytes_per_row = HW * (4 * itemsize + 8)
    tr_vmem = (budget // bytes_per_row) // 8 * 8

    io_alias = {0: 0} if (donate_x and NC_p == NC) else {}
    flops = 6 * NC * HW
    bytes_accessed = 2 * NC * HW * itemsize + 4 * NC * 4

    if tr_vmem >= 8:
        # ---------------- single-pass path (HW kept whole on the lane axis) ----
        # Keep enough grid steps for pipelining + megacore sharding (v7x: 2 TCs).
        min_steps = 8 if NC_p >= 64 else (2 if NC_p > 8 else 1)
        tr_steps = max(8, _round_up(-(-NC_p // min_steps), 8))
        TR = int(max(8, min(512, tr_vmem, tr_steps, NC_p)))
        grid = (pl.cdiv(NC_p, TR),)

        tile_bytes = TR * HW * itemsize
        est_vmem = 4 * tile_bytes + 4 * TR * HW * 4 + (2 << 20)
        vmem_limit = int(min(0.9 * vmem_cap, max(est_vmem, 32 << 20)))

        out2 = pl.pallas_call(
            functools.partial(_adain_kernel, eps=eps),
            out_shape=jax.ShapeDtypeStruct((NC_p, HW), x.dtype),
            grid_spec=pltpu.PrefetchScalarGridSpec(
                num_scalar_prefetch=0,
                grid=grid,
                in_specs=[
                    pl.BlockSpec((TR, HW), lambda i: (i, 0)),
                    pl.BlockSpec((TR, 2), lambda i: (i, 0)),
                ],
                out_specs=pl.BlockSpec((TR, HW), lambda i: (i, 0)),
            ),
            compiler_params=pltpu.CompilerParams(
                dimension_semantics=("parallel",),
                vmem_limit_bytes=vmem_limit,
            ),
            cost_estimate=pl.CostEstimate(
                flops=flops, transcendentals=NC, bytes_accessed=bytes_accessed
            ),
            input_output_aliases=io_alias,
        )(x2, gb)
    else:
        # ---------------- column-blocked two-pass path (small NC, huge HW) -----
        TR = int(max(8, min(64, NC_p) // 8 * 8))
        bytes_per_elem = 4 * itemsize + 8
        TC = max(128, (budget // (TR * bytes_per_elem)) // 128 * 128)
        TC = int(min(TC, _round_up(HW, 128)))
        n_r = pl.cdiv(NC_p, TR)
        n_c = pl.cdiv(HW, TC)

        tile_bytes = TR * TC * itemsize
        est_vmem = 4 * tile_bytes + 4 * TR * TC * 4 + (2 << 20)
        vmem_limit = int(min(0.9 * vmem_cap, max(est_vmem, 32 << 20)))

        # Pass 1: per-row (mean, var) -> fused (a, b) coefficients.
        coef = pl.pallas_call(
            functools.partial(_stats_kernel, eps=eps, hw=HW, tc=TC),
            out_shape=jax.ShapeDtypeStruct((NC_p, 2), jnp.float32),
            grid_spec=pltpu.PrefetchScalarGridSpec(
                num_scalar_prefetch=0,
                grid=(n_r, n_c),
                in_specs=[
                    pl.BlockSpec((TR, TC), lambda r, c: (r, c)),
                    pl.BlockSpec((TR, 2), lambda r, c: (r, 0)),
                ],
                out_specs=pl.BlockSpec((TR, 2), lambda r, c: (r, 0)),
                scratch_shapes=[
                    pltpu.VMEM((TR, 1), jnp.float32),
                    pltpu.VMEM((TR, 1), jnp.float32),
                ],
            ),
            compiler_params=pltpu.CompilerParams(
                dimension_semantics=("parallel", "arbitrary"),
                vmem_limit_bytes=vmem_limit,
            ),
            cost_estimate=pl.CostEstimate(
                flops=3 * NC * HW,
                transcendentals=NC,
                bytes_accessed=NC * HW * itemsize,
            ),
        )(x2, gb)

        # Pass 2: o = a * x + b, fully blocked in both axes.
        out2 = pl.pallas_call(
            _apply_kernel,
            out_shape=jax.ShapeDtypeStruct((NC_p, HW), x.dtype),
            grid_spec=pltpu.PrefetchScalarGridSpec(
                num_scalar_prefetch=0,
                grid=(n_r, n_c),
                in_specs=[
                    pl.BlockSpec((TR, TC), lambda r, c: (r, c)),
                    pl.BlockSpec((TR, 2), lambda r, c: (r, 0)),
                ],
                out_specs=pl.BlockSpec((TR, TC), lambda r, c: (r, c)),
            ),
            compiler_params=pltpu.CompilerParams(
                dimension_semantics=("parallel", "parallel"),
                vmem_limit_bytes=vmem_limit,
            ),
            cost_estimate=pl.CostEstimate(
                flops=2 * NC * HW,
                transcendentals=0,
                bytes_accessed=2 * NC * HW * itemsize,
            ),
            input_output_aliases=io_alias,
        )(x2, coef)

    if NC_p != NC:
        out2 = out2[:NC]
    return out2.reshape(N, C, H, W)


# --------------------------------------------------------------------------
# Pure-JAX reference
# --------------------------------------------------------------------------
def adain2d_ref(x, gamma, beta, *, eps=1e-5):
    N, C, H, W = x.shape
    x2 = x.reshape(N * C, H * W).astype(jnp.float32)
    mean = jnp.mean(x2, axis=-1, keepdims=True)
    var = jnp.var(x2, axis=-1, keepdims=True)  # biased, matches batch_norm training
    xhat = (x2 - mean) / jnp.sqrt(var + eps)
    out = xhat * gamma.reshape(-1, 1) + beta.reshape(-1, 1)
    return out.reshape(N, C, H, W).astype(x.dtype)


if __name__ == "__main__":
    key = jax.random.PRNGKey(0)
    kx, kg, kb = jax.random.split(key, 3)

    N, C, H, W = 2, 4, 16, 16
    x = jax.random.normal(kx, (N, C, H, W), dtype=jnp.float32)
    # In TUNIT, weight/bias are set per-sample by the style network -> shape (N*C,)
    gamma = jax.random.normal(kg, (N * C,), dtype=jnp.float32) * 0.5 + 1.0
    beta = jax.random.normal(kb, (N * C,), dtype=jnp.float32) * 0.1

    out = adain2d(x, gamma, beta)
    out = jax.block_until_ready(out)

    ref = adain2d_ref(x, gamma, beta)
    np.testing.assert_allclose(np.asarray(out), np.asarray(ref), rtol=1e-4, atol=1e-5)

    # TODO(synk): running_mean/running_var buffer update (momentum) is a training-time
    # side effect that does not influence the forward output, so it is not emitted.
    print("KERNEL_OK")
</pallas_src>

<mosaic_0001>
module attributes {stable_mosaic.version = 11 : i64} {
  func.func @_adain_kernel(%arg0: i32, %arg1: memref<8x256xf32, #tpu.memory_space<vmem>>, %arg2: memref<8x2xf32, #tpu.memory_space<vmem>>, %arg3: memref<8x256xf32, #tpu.memory_space<vmem>>) attributes {dimension_semantics = [#tpu.dimension_semantics<parallel>], iteration_bounds = array<i64: 1>, scalar_prefetch = 0 : i64, scratch_operands = 0 : i64, tpu.core_type = #tpu.core_type<tc>, window_params = [{transform_indices = @transform_0, window_bounds = array<i64: 8, 256>}, {transform_indices = @transform_1, window_bounds = array<i64: 8, 2>}, {transform_indices = @transform_2, window_bounds = array<i64: 8, 256>}]} {
    %c0 = arith.constant 0 : index
    %c0_0 = arith.constant 0 : index
    %0 = vector.load %arg1[%c0, %c0_0] : memref<8x256xf32, #tpu.memory_space<vmem>>, vector<8x256xf32>
    %cst = arith.constant dense<0.000000e+00> : vector<8xf32>
    %1 = vector.multi_reduction <add>, %0, %cst [1] : vector<8x256xf32> to vector<8xf32>
    %2 = vector.shape_cast %1 : vector<8xf32> to vector<8x1xf32>
    %3 = arith.mulf %0, %0 : vector<8x256xf32>
    %cst_1 = arith.constant dense<0.000000e+00> : vector<8xf32>
    %4 = vector.multi_reduction <add>, %3, %cst_1 [1] : vector<8x256xf32> to vector<8xf32>
    %5 = vector.shape_cast %4 : vector<8xf32> to vector<8x1xf32>
    %cst_2 = arith.constant 3.906250e-03 : f32
    %6 = vector.broadcast %cst_2 : f32 to vector<8x1xf32>
    %7 = arith.mulf %2, %6 : vector<8x1xf32>
    %cst_3 = arith.constant 3.906250e-03 : f32
    %8 = vector.broadcast %cst_3 : f32 to vector<8x1xf32>
    %9 = arith.mulf %5, %8 : vector<8x1xf32>
    %10 = arith.mulf %7, %7 : vector<8x1xf32>
    %11 = arith.subf %9, %10 : vector<8x1xf32>
    %cst_4 = arith.constant 9.99999974E-6 : f32
    %12 = vector.broadcast %cst_4 : f32 to vector<8x1xf32>
    %13 = arith.addf %11, %12 : vector<8x1xf32>
    %14 = math.rsqrt %13 : vector<8x1xf32>
    %c0_5 = arith.constant 0 : index
    %c0_6 = arith.constant 0 : index
    %15 = vector.load %arg2[%c0_5, %c0_6] : memref<8x2xf32, #tpu.memory_space<vmem>>, vector<8x1xf32>
    %c0_7 = arith.constant 0 : index
    %c1 = arith.constant 1 : index
    %16 = vector.load %arg2[%c0_7, %c1] : memref<8x2xf32, #tpu.memory_space<vmem>>, vector<8x1xf32>
    %17 = arith.mulf %14, %15 : vector<8x1xf32>
    %18 = arith.mulf %7, %17 : vector<8x1xf32>
    %19 = arith.subf %16, %18 : vector<8x1xf32>
    %20 = vector.broadcast %17 : vector<8x1xf32> to vector<8x256xf32>
    %21 = arith.mulf %0, %20 : vector<8x256xf32>
    %22 = vector.broadcast %19 : vector<8x1xf32> to vector<8x256xf32>
    %23 = arith.addf %21, %22 : vector<8x256xf32>
    %c0_8 = arith.constant 0 : index
    %c0_9 = arith.constant 0 : index
    %24 = vector.load %arg3[%c0_8, %c0_9] : memref<8x256xf32, #tpu.memory_space<vmem>>, vector<8x256xf32>
    tpu.vector_store %arg3[%c0_8, %c0_9], %23 {strides = array<i32>} : memref<8x256xf32, #tpu.memory_space<vmem>>, vector<8x256xf32>,
    return
  }
  func.func @transform_0(%arg0: i32) -> (i32, i32) {
    %c0_i32 = arith.constant 0 : i32
    %c0_i32_0 = arith.constant 0 : i32
    return %arg0, %c0_i32 : i32, i32
  }
  func.func @transform_1(%arg0: i32) -> (i32, i32) {
    %c0_i32 = arith.constant 0 : i32
    %c0_i32_0 = arith.constant 0 : i32
    return %arg0, %c0_i32 : i32, i32
  }
  func.func @transform_2(%arg0: i32) -> (i32, i32) {
    %c0_i32 = arith.constant 0 : i32
    %c0_i32_0 = arith.constant 0 : i32
    return %arg0, %c0_i32 : i32, i32
  }
}

</mosaic_0001>

<bundles_post_ra>
// kernel: tpu_custom_call.1
= control target key start
LH: loop header
LB: loop body
LE: loop exit
PB: predicated region body
PF: predicated region fallthrough
CT: control target
= control target key end

     0   :  { %7 = vsyncpa [#allocation3], 0  ;;  %s183_s0 = inlined_call_operand.hbm [shape: f32[8,256], index: 0, kind: input, shape index: {}]   ;;  %s184_s1 = inlined_call_operand.vmem [shape: f32[8,2], index: 1, kind: input, shape index: {}]   ;;  %s185_s2 = inlined_call_operand.hbm [shape: f32[8,256], index: 2, kind: output, shape index: {}]  }
   0x1   :  { %8 = vsyncpa [#allocation4], 0  ;;  %s136_s9 = smov [#allocation2]   ;;  %s88_s13 = scalar_lea.hbm %s183_s0, 256 }
   0x2   :  { %s15_s10 = sshll.u32 %s136_s9, 4  ;;  %p89_p0 = scmp.ne.s32.totalorder %s183_s0, %s88_s13  ;;  %s16_s10 = int_to_ptr.vmem [resolvable:$true] %s15_s10 }
   0x3   :  { %p92_p1 = scmp.lt.u32.totalorder %s88_s13, %s183_s0 }
   0x5   :  { %p94_p2 = pnand %p92_p1, %p89_p0 }
   0x7   :  { %97 = shalt.err (!%p94_p2)
}
   0x8   :  { %s98_s18 = scalar_lea.vmem %s16_s10, 256  ;;  %p103_p4 = scmp.lt.s32.totalorder %s16_s10, %s16_s10 }
   0x9   :  { %p99_p3 = scmp.ne.s32.totalorder %s16_s10, %s98_s18  ;;  %p104_p5 = scmp.lt.s32.totalorder %s98_s18, %s98_s18 }
   0xb   :  { %p105_p6 = por %p104_p5, %p103_p4 }
   0xd   :  { %p106_p7 = pnand %p105_p6, %p99_p3 }
   0xf   :  { %109 = shalt.err (!%p106_p7)
}
  0x10   :  { %18 = dma.hbm_to_vmem [thread:$0]  %s183_s0, 256, %s16_s10, [#allocation3]  }
  0x11   :  { %132 = dma.done.wait [#allocation3], 256  }
  0x12   :  { %133 = vsyncadd [#allocation3], 4294967040  ;;  %v24_v0 = vld [vmem:[#allocation2] sm:$0xff]  ;;  %v25_v1 = vld [vmem:[#allocation2 + $0x8] sm:$0xff]  ;;  %v137_v6 = vmov 0   ;;  %v138_v14 = vmov 1  }
  0x13   :  { %v26_v2 = vadd.f32 %v25_v1, %v24_v0  ;;  %v29_v3 = vmul.f32 %v24_v0, %v24_v0  ;;  %v30_v4 = vmul.f32 %v25_v1, %v25_v1  ;;  %84 = vset.pattern.permute.xlu1 %v137_v6  ;;  %85 = vset.pattern.permute.xlu0 %v138_v14  ;;  %v40_v15 = vld [vmem:[%s184_s1] sm:$0xff]  ;;  %s139_s22 = smov 1   ;;  %s140_s23 = smov [#allocation5]  }
  0x14   :  { %s70_s24 = sshll.u32 %s140_s23, 4  ;;  %s71_s24 = int_to_ptr.vmem [resolvable:$true] %s70_s24 }
  0x15   :  { %27 = vadd.xlane.f32.xlu0 %v26_v2  ;;  %v31_v5 = vadd.f32 %v30_v4, %v29_v3  ;;  %s110_s1 = scalar_lea.vmem %s71_s24, 256  ;;  %p115_p9 = scmp.lt.s32.totalorder %s71_s24, %s71_s24 }
  0x16   :  { %p111_p8 = scmp.ne.s32.totalorder %s71_s24, %s110_s1  ;;  %p116_p10 = scmp.lt.s32.totalorder %s110_s1, %s110_s1 }
  0x18   :  { %p117_p11 = por %p116_p10, %p115_p9 }
  0x19   :  { %32 = vadd.xlane.f32.xlu0 %v31_v5 }
  0x1a   :  { %p118_p12 = pnand %p117_p11, %p111_p8 }
  0xa2   :  { %v28_v7 = vpop.xlane.xlu0 %27 }
  0xa3   :  { %v34_v8 = vmul.f32 0.00390625, %v28_v7 }
  0xa5   :  { %v36_v10 = vmul.f32 %v34_v8, %v34_v8 }
  0xa6   :  { %v33_v9 = vpop.xlane.xlu0 %32 }
  0xa7   :  { %v35_v11 = vmul.f32 0.00390625, %v33_v9 }
  0xa9   :  { %v37_v12 = vsub.f32 %v35_v11, %v36_v10 }
  0xab   :  { %v38_v13 = vadd.f32 1e-05, %v37_v12 }
  0xad   :  { %86 = vrsqrt.f32 %v38_v13 }
  0xb7   :  { %v87_v16 = vpop.eup %86 }
  0xb8   :  { %v41_v17 = vmul.f32 %v87_v16, %v40_v15 }
  0xba   :  { %v42_v18 = vmul.f32 %v41_v17, %v34_v8 }
  0xbc   :  { %44 = vrot.lane.b32.xlu1 %v42_v18, %s139_s22 }
  0xc0   :  { %50 = vperm.xlu1 %84, %v41_v17  }
 0x12e   :  { %v45_v19 = vpop.permute.xlu1 %44 }
 0x12f   :  { %v47_v20 = vsub.f32 %v40_v15, %v45_v19 }
 0x131   :  { %57 = vperm.xlu0 %85, %v47_v20  }
 0x13f   :  { %v51_v21 = vpop.permute.xlu1 %50 }
 0x140   :  { %v53_v22 = vmul.f32 %v51_v21, %v24_v0  ;;  %v54_v23 = vmul.f32 %v51_v21, %v25_v1 }
 0x1b0   :  { %v58_v24 = vpop.permute.xlu0 %57 }
 0x1b1   :  { %v60_v25 = vadd.f32 %v58_v24, %v53_v22  ;;  %v61_v26 = vadd.f32 %v58_v24, %v54_v23 }
 0x1b3   :  { %62 = vst [vmem:[#allocation5] sm:$0xff] %v60_v25  ;;  %63 = vst [vmem:[#allocation5 + $0x8] sm:$0xff] %v61_v26 }
 0x1b4   :  { %121 = shalt.err (!%p118_p12)
}
 0x1b5   :  { %s122_s27 = scalar_lea.hbm %s185_s2, 256 }
 0x1b6   :  { %p123_p13 = scmp.ne.s32.totalorder %s185_s2, %s122_s27  ;;  %p126_p0 = scmp.lt.u32.totalorder %s122_s27, %s185_s2 }
 0x1b8   :  { %p128_p1 = pnand %p126_p0, %p123_p13 }
 0x1ba   :  { %131 = shalt.err (!%p128_p1)
}
 0x1bb   :  { %73 = dma.vmem_to_hbm [thread:$0]  %s71_s24, 256, %s185_s2, [#allocation4]  }
 0x1bc   :  { %134 = dma.done.wait [#allocation4], 256  }
 0x1bd   :  { %135 = vsyncadd [#allocation4], 4294967040 }
 0x1be   :  { %77 = vsyncpa [#allocation3], 1 }
 0x1bf   :  { %78 = vsyncpa [#allocation4], 1 }

</bundles_post_ra>
